<compile_context>
chip_gen: v7x
topology: tpu7x:2x2x1
jax: 0.10.0
libtpu: 0.0.40
codegen_flags: <defaults>
</compile_context>

<pallas_src>
from functools import partial

import numpy as np
import jax
import jax.numpy as jnp
from jax.experimental import pallas as pl
from jax.experimental.pallas import tpu as pltpu


def _sentence_cnn_kernel(x_ref, w_ref, b_ref, mask_ref, o_ref):
    """Fused im2col conv (all kernel sizes) + bias + ReLU + masked max-over-time.

    x_ref:    (Bblk, S, E)      bf16 embedded sentences (unpadded)
    w_ref:    (h_max*E, K_pad)  bf16 stacked, zero-padded conv weights (im2col)
    b_ref:    (1, K_pad)        f32 bias (0 in pad columns)
    mask_ref: (S, K_pad)        f32 {0,1} valid-conv-position mask per column
    o_ref:    (Bblk, K_pad)     f32 pooled features
    """
    bblk, s, e = x_ref.shape
    ke, k_pad = w_ref.shape
    h_max = ke // e

    x = x_ref[...]                                            # (bblk, s, e) bf16

    # Append the (h_max - 1) zero rows in VMEM (instead of an HBM-level pad)
    # and build the im2col LHS by concatenating the h_max shifted views along
    # the lane axis: one deep (bblk*s, h_max*e) @ (h_max*e, k_pad) MXU matmul
    # replaces h_max shallow K=e matmuls + (h_max-1) full-tensor f32 adds.
    if h_max > 1:
        xp = jnp.concatenate(
            [x, jnp.zeros((bblk, h_max - 1, e), x.dtype)], axis=1)
    else:
        xp = x
    lhs = jnp.concatenate(
        [xp[:, dh:dh + s, :] for dh in range(h_max)], axis=-1)
    lhs = lhs.reshape(bblk * s, h_max * e)

    acc = jnp.dot(lhs, w_ref[...], preferred_element_type=jnp.float32)
    acc = jnp.maximum(acc + b_ref[...], 0.0)                  # bias + ReLU (f32)

    # Zero conv positions that are invalid for a column's kernel size (and the
    # zero-pad columns).  Post-ReLU values are >= 0, so a single multiply keeps
    # the max-over-time identical to pooling over only the valid positions.
    acc = acc.reshape(bblk, s, k_pad) * mask_ref[...]
    o_ref[...] = jnp.max(acc, axis=1).astype(o_ref.dtype)


def _pick_batch_block(batch, seq, emb, h_max, k_pad):
    """Batch rows per grid step.

    Aim for >= ~4096 matmul rows per step (per-step overhead ~0.35us), keep the
    block a multiple of 8 (or the full batch), stay under a ~20 MiB VMEM budget
    (headroom below the 32 MiB limit set on the call), and leave >= 2 grid
    steps when the batch allows so both v7x TensorCores get work.
    """
    if batch <= 8:
        return batch

    target_rows = 4096
    b_blk = (-(-target_rows // seq) + 7) // 8 * 8   # ceil(4096/seq), round to 8

    def vmem_bytes(bb):
        x_blk = bb * seq * emb * 2                  # bf16 input block
        lhs = bb * seq * h_max * emb * 2            # bf16 im2col LHS
        acc = bb * seq * k_pad * 4                  # f32 conv + relu activations
        out = bb * k_pad * 4                        # f32 pooled output
        return 2 * x_blk + lhs + acc + 2 * out      # double-buffered x / out

    while b_blk > 8 and vmem_bytes(b_blk) > 20 * 1024 * 1024:
        b_blk -= 8

    if batch >= 16:                                 # >= 2 grid steps (v7x 2 TCs)
        half = (-(-batch // 2) + 7) // 8 * 8
        b_blk = min(b_blk, half)

    if b_blk >= batch:
        return batch
    return max(8, b_blk)


def _sentence_cnn(x, w_stacked, b_pad, mask, *, b_blk):
    """x: (B, S, E) bf16 -> (B, K_pad) f32 pooled features."""
    B, S, E = x.shape
    KE, K_pad = w_stacked.shape
    grid = (pl.cdiv(B, b_blk),)
    # TODO(synk): for very long sequences, add an inner "arbitrary" seq-chunk
    # grid axis with a running-max VMEM accumulator so the f32 activation block
    # is bounded independently of S; not needed at sentence-length scales.
    return pl.pallas_call(
        _sentence_cnn_kernel,
        out_shape=jax.ShapeDtypeStruct((B, K_pad), jnp.float32),
        grid=grid,
        in_specs=[
            pl.BlockSpec((b_blk, S, E), lambda i: (i, 0, 0)),
            pl.BlockSpec((KE, K_pad), lambda i: (0, 0)),
            pl.BlockSpec((1, K_pad), lambda i: (0, 0)),
            pl.BlockSpec((S, K_pad), lambda i: (0, 0)),
        ],
        out_specs=pl.BlockSpec((b_blk, K_pad), lambda i: (i, 0)),
        compiler_params=pltpu.CompilerParams(
            dimension_semantics=("parallel",),
            vmem_limit_bytes=32 * 1024 * 1024),
    )(x, w_stacked, b_pad, mask)


@partial(jax.jit, static_argnames=("b_blk", "k_total"))
def _forward(s, emb, w_stacked, b_stacked, mask, *, b_blk, k_total):
    # TODO(synk): the embedding row-gather stays in XLA; a data-dependent
    # gather from a large (vocab, E) table has no clean in-kernel Pallas
    # equivalent (it would need a manual DMA gather).
    x = jnp.take(emb, s, axis=0)                    # (B, S, E) bf16 gather
    out_pad = _sentence_cnn(x, w_stacked, b_stacked, mask, b_blk=b_blk)
    return out_pad[:, :k_total]


class SentenceEncoderPallas:
    """JAX/Pallas port of the PyTorch SentenceEncoder forward pass."""

    def __init__(self, vocab_size, emb_size, n_kernels, kernel_sizes, key):
        self.vocab_size = vocab_size
        self.emb_size = emb_size
        self.n_kernels = n_kernels
        self.kernel_sizes = tuple(kernel_sizes)
        self.h_max = max(self.kernel_sizes)
        self.k_total = n_kernels * len(self.kernel_sizes)
        self.k_pad = ((self.k_total + 127) // 128) * 128   # lane-dense N

        keys = jax.random.split(key, 1 + 2 * len(self.kernel_sizes))
        # nn.Embedding(vocab_size, emb_size) -- stored bf16: the gather writes
        # bf16 straight to HBM and the matmul input needs no extra cast pass.
        self.emb = (0.1 * jax.random.normal(
            keys[0], (vocab_size, emb_size), jnp.float32)).astype(jnp.bfloat16)

        # per-size params (f32) kept only for the pure-JAX reference
        self._w_per_size = []   # (h, E, K)
        self._b_per_size = []   # (K,)

        w_stack = np.zeros((self.h_max, emb_size, self.k_pad), np.float32)
        b_stack = np.zeros((1, self.k_pad), np.float32)
        for i, h in enumerate(self.kernel_sizes):
            # nn.Conv2d(1, n_kernels, (h, emb_size)) weight: (K, 1, h, E)
            w_torch = 0.1 * jax.random.normal(
                keys[1 + 2 * i], (n_kernels, 1, h, emb_size), jnp.float32)
            b = 0.1 * jax.random.normal(keys[2 + 2 * i], (n_kernels,),
                                        jnp.float32)
            w_hek = jnp.transpose(w_torch[:, 0, :, :], (1, 2, 0))   # (h, E, K)
            self._w_per_size.append(w_hek)
            self._b_per_size.append(b)
            c0, c1 = i * n_kernels, (i + 1) * n_kernels
            w_stack[:h, :, c0:c1] = np.asarray(w_hek)   # zero rows for dh >= h
            b_stack[0, c0:c1] = np.asarray(b)

        # im2col weight layout: (h_max, E, K_pad) -> (h_max*E, K_pad), bf16
        self.w_stacked = jnp.asarray(
            w_stack.reshape(self.h_max * emb_size, self.k_pad), jnp.bfloat16)
        self.b_stacked = jnp.asarray(b_stack, jnp.float32)

        self._mask_cache = {}   # per-S {0,1} valid-position masks

    def _mask_for_seq(self, S):
        m = self._mask_cache.get(S)
        if m is None:
            mask = np.zeros((S, self.k_pad), np.float32)
            for i, h in enumerate(self.kernel_sizes):
                mask[:S - h + 1,
                     i * self.n_kernels:(i + 1) * self.n_kernels] = 1.0
            m = jnp.asarray(mask)
            self._mask_cache[S] = m
        return m

    def __call__(self, s):
        """s: int32 (B, S) word indices -> (B, n_kernels * len(kernel_sizes))."""
        B, S = s.shape
        if S < self.h_max:
            raise ValueError(
                f"sequence length {S} is shorter than the largest kernel "
                f"size {self.h_max} (PyTorch Conv2d would fail here too)")
        mask = self._mask_for_seq(S)
        b_blk = _pick_batch_block(B, S, self.emb_size, self.h_max, self.k_pad)
        return _forward(s, self.emb, self.w_stacked, self.b_stacked, mask,
                        b_blk=b_blk, k_total=self.k_total)

    def reference(self, s):
        """Pure-JAX reference (same numerics: bf16 inputs, f32 accumulate)."""
        x = jnp.take(self.emb, s, axis=0)            # (B, S, E) bf16
        outs = []
        for h, w, b in zip(self.kernel_sizes, self._w_per_size,
                           self._b_per_size):
            L = x.shape[1] - h + 1
            wb = w.astype(jnp.bfloat16)
            acc = jnp.zeros((x.shape[0], L, self.n_kernels), jnp.float32)
            for dh in range(h):
                acc = acc + jnp.einsum('ble,ek->blk', x[:, dh:dh + L, :],
                                       wb[dh],
                                       preferred_element_type=jnp.float32)
            acc = jnp.maximum(acc + b[None, None, :], 0.0)
            outs.append(jnp.max(acc, axis=1))
        return jnp.concatenate(outs, axis=1)


if __name__ == "__main__":
    key = jax.random.PRNGKey(0)
    k_param, k_data = jax.random.split(key)

    vocab_size = 50
    emb_size = 32
    n_kernels = 8
    kernel_sizes = (2, 3, 4)
    batch = 2
    seq_len = 16

    model = SentenceEncoderPallas(vocab_size, emb_size, n_kernels,
                                  kernel_sizes, k_param)

    s = jax.random.randint(k_data, (batch, seq_len), 0, vocab_size,
                           dtype=jnp.int32)

    out = jax.block_until_ready(model(s))
    ref = jax.block_until_ready(model.reference(s))

    np.testing.assert_allclose(np.asarray(out), np.asarray(ref),
                               rtol=1e-4, atol=1e-4)
    assert out.shape == (batch, n_kernels * len(kernel_sizes))

    print("KERNEL_OK")
</pallas_src>

<mosaic_0001>
module attributes {stable_mosaic.version = 11 : i64} {
  func.func @_sentence_cnn_kernel(%arg0: i32, %arg1: memref<2x16x32xbf16, #tpu.memory_space<vmem>>, %arg2: memref<128x128xbf16, #tpu.memory_space<vmem>>, %arg3: memref<1x128xf32, #tpu.memory_space<vmem>>, %arg4: memref<16x128xf32, #tpu.memory_space<vmem>>, %arg5: memref<2x128xf32, #tpu.memory_space<vmem>>) attributes {dimension_semantics = [#tpu.dimension_semantics<parallel>], iteration_bounds = array<i64: 1>, scalar_prefetch = 0 : i64, scratch_operands = 0 : i64, tpu.core_type = #tpu.core_type<tc>, window_params = [{transform_indices = @transform_0, window_bounds = array<i64: 2, 16, 32>}, {pipeline_mode = #tpu.pipeline_mode<synchronous>, transform_indices = @transform_1, window_bounds = array<i64: 128, 128>}, {pipeline_mode = #tpu.pipeline_mode<synchronous>, transform_indices = @transform_2, window_bounds = array<i64: 1, 128>}, {pipeline_mode = #tpu.pipeline_mode<synchronous>, transform_indices = @transform_3, window_bounds = array<i64: 16, 128>}, {transform_indices = @transform_4, window_bounds = array<i64: 2, 128>}]} {
    %c0 = arith.constant 0 : index
    %c0_0 = arith.constant 0 : index
    %c0_1 = arith.constant 0 : index
    %0 = vector.load %arg1[%c0, %c0_0, %c0_1] : memref<2x16x32xbf16, #tpu.memory_space<vmem>>, vector<2x16x32xbf16>
    %cst = arith.constant 0.000000e+00 : bf16
    %1 = vector.broadcast %cst : bf16 to vector<2x3x32xbf16>
    %2 = tpu.concatenate %0, %1 in 1 : vector<2x16x32xbf16>, vector<2x3x32xbf16> -> vector<2x19x32xbf16>
    %3 = vector.extract_strided_slice %2 {offsets = [0, 0, 0], sizes = [2, 16, 32], strides = [1, 1, 1]} : vector<2x19x32xbf16> to vector<2x16x32xbf16>
    %4 = vector.extract_strided_slice %2 {offsets = [0, 1, 0], sizes = [2, 16, 32], strides = [1, 1, 1]} : vector<2x19x32xbf16> to vector<2x16x32xbf16>
    %5 = vector.extract_strided_slice %2 {offsets = [0, 2, 0], sizes = [2, 16, 32], strides = [1, 1, 1]} : vector<2x19x32xbf16> to vector<2x16x32xbf16>
    %6 = vector.extract_strided_slice %2 {offsets = [0, 3, 0], sizes = [2, 16, 32], strides = [1, 1, 1]} : vector<2x19x32xbf16> to vector<2x16x32xbf16>
    %7 = tpu.concatenate %3, %4, %5, %6 in 2 : vector<2x16x32xbf16>, vector<2x16x32xbf16>, vector<2x16x32xbf16>, vector<2x16x32xbf16> -> vector<2x16x128xbf16>
    %8 = vector.shape_cast %7 : vector<2x16x128xbf16> to vector<32x128xbf16>
    %c0_2 = arith.constant 0 : index
    %c0_3 = arith.constant 0 : index
    %9 = vector.load %arg2[%c0_2, %c0_3] : memref<128x128xbf16, #tpu.memory_space<vmem>>, vector<128x128xbf16>
    %cst_4 = arith.constant dense<0.000000e+00> : vector<32x128xf32>
    %10 = tpu.matmul %8, %9, %cst_4 {dimension_numbers = #tpu.dot_dimension_numbers<[1], [0], [0], [1], [0, 0, 1, 1], [], []>} : vector<32x128xbf16>, vector<128x128xbf16>, vector<32x128xf32> -> vector<32x128xf32>
    %c0_5 = arith.constant 0 : index
    %c0_6 = arith.constant 0 : index
    %11 = vector.load %arg3[%c0_5, %c0_6] : memref<1x128xf32, #tpu.memory_space<vmem>>, vector<1x128xf32>
    %12 = vector.broadcast %11 : vector<1x128xf32> to vector<32x128xf32>
    %13 = arith.addf %10, %12 : vector<32x128xf32>
    %cst_7 = arith.constant 0.000000e+00 : f32
    %14 = vector.broadcast %cst_7 : f32 to vector<32x128xf32>
    %15 = arith.maximumf %13, %14 : vector<32x128xf32>
    %16 = vector.shape_cast %15 : vector<32x128xf32> to vector<2x16x128xf32>
    %c0_8 = arith.constant 0 : index
    %c0_9 = arith.constant 0 : index
    %17 = vector.load %arg4[%c0_8, %c0_9] : memref<16x128xf32, #tpu.memory_space<vmem>>, vector<16x128xf32>
    %18 = vector.shape_cast %17 : vector<16x128xf32> to vector<1x16x128xf32>
    %19 = vector.broadcast %18 : vector<1x16x128xf32> to vector<2x16x128xf32>
    %20 = arith.mulf %16, %19 : vector<2x16x128xf32>
    %cst_10 = arith.constant dense<0xFF800000> : vector<2x128xf32>
    %21 = vector.multi_reduction <maximumf>, %20, %cst_10 [1] : vector<2x16x128xf32> to vector<2x128xf32>
    %c0_11 = arith.constant 0 : index
    %c0_12 = arith.constant 0 : index
    %22 = vector.load %arg5[%c0_11, %c0_12] : memref<2x128xf32, #tpu.memory_space<vmem>>, vector<2x128xf32>
    tpu.vector_store %arg5[%c0_11, %c0_12], %21 {strides = array<i32>} : memref<2x128xf32, #tpu.memory_space<vmem>>, vector<2x128xf32>,
    return
  }
  func.func @transform_0(%arg0: i32) -> (i32, i32, i32) {
    %c0_i32 = arith.constant 0 : i32
    %c0_i32_0 = arith.constant 0 : i32
    %c0_i32_1 = arith.constant 0 : i32
    return %arg0, %c0_i32, %c0_i32_0 : i32, i32, i32
  }
  func.func @transform_1(%arg0: i32) -> (i32, i32) {
    %c0_i32 = arith.constant 0 : i32
    %c0_i32_0 = arith.constant 0 : i32
    %c0_i32_1 = arith.constant 0 : i32
    return %c0_i32, %c0_i32_0 : i32, i32
  }
  func.func @transform_2(%arg0: i32) -> (i32, i32) {
    %c0_i32 = arith.constant 0 : i32
    %c0_i32_0 = arith.constant 0 : i32
    %c0_i32_1 = arith.constant 0 : i32
    return %c0_i32, %c0_i32_0 : i32, i32
  }
  func.func @transform_3(%arg0: i32) -> (i32, i32) {
    %c0_i32 = arith.constant 0 : i32
    %c0_i32_0 = arith.constant 0 : i32
    %c0_i32_1 = arith.constant 0 : i32
    return %c0_i32, %c0_i32_0 : i32, i32
  }
  func.func @transform_4(%arg0: i32) -> (i32, i32) {
    %c0_i32 = arith.constant 0 : i32
    %c0_i32_0 = arith.constant 0 : i32
    return %arg0, %c0_i32 : i32, i32
  }
}

</mosaic_0001>

<bundles_post_ra>
// kernel: _forward.1
= control target key start
LH: loop header
LB: loop body
LE: loop exit
PB: predicated region body
PF: predicated region fallthrough
CT: control target
= control target key end

     0   :  { %v348_v1 = vmov 0   ;;  %vm59_vm0 = vcmask 1046528   ;;  %vm33_vm1 = vsmask.f32 7424  ;;  %vm69_vm2 = vsmask.f32 6400  ;;  %s447_s0 = inlined_call_operand.vmem [shape: bf16[2,16,32], index: 0, kind: input, shape index: {}]   ;;  %s448_s1 = inlined_call_operand.vmem [shape: bf16[128,128], index: 1, kind: input, shape index: {}]   ;;  %s449_s2 = inlined_call_operand.vmem [shape: f32[1,128], index: 2, kind: input, shape index: {}]   ;;  %s450_s3 = inlined_call_operand.vmem [shape: f32[16,128], index: 3, kind: input, shape index: {}]   ;;  %s451_s4 = inlined_call_operand.hbm [shape: f32[2,128], index: 4, kind: output, shape index: {}]  }
   0x1   :  { %v381_v0 = vld [vmem:[%s447_s0] sm:$0xff]   ;;  %v44_v2 = vrot.slane %v348_v1, 1  ;;  %v389_v6 = vld [vmem:[%s447_s0 + $0x8] sm:$0xff]   ;;  %v76_v7 = vrot.slane %v348_v1, 2  ;;  %s349_s21 = smov 64   ;;  %v318_v24 = vld [vmem:[%s448_s1 + $0x10] sm:$0xff]  }
   0x2   :  { %v60_v3 = vrot.slane %v381_v0, 1  ;;  %v35_v4 = vshrl.u32 %v381_v0, 16  ;;  %v37_v5 = vshll.u32 %v381_v0, 16  ;;  %v63_v10 = vrot.slane %v389_v6, 1  ;;  %v316_v12 = vld [vmem:[%s448_s1] sm:$0xff]   ;;  %v317_v15 = vld [vmem:[%s448_s1 + $0x8] sm:$0xff]  }
   0x3   :  { %v47_v11 = vshrl.u32 %v389_v6, 16  ;;  %v49_v13 = vshll.u32 %v389_v6, 16  ;;  %289 = vmatprep.subr.bf16.mxu0 %v316_v12  ;;  %v77_v21 = vor.u32 %v76_v7, %v44_v2  ;;  %s350_s25 = smov 32   ;;  %v319_v30 = vld [vmem:[%s448_s1 + $0x18] sm:$0xff]   ;;  %s351_s28 = smov 96  }
   0x4   :  { %v62_v8 = vsel %vm59_vm0, %v60_v3, %v44_v2  ;;  %v39_v9 = vrot.slane %v37_v5, 1  ;;  %v70_v14 = vrot.slane %v35_v4, 1  ;;  %v64_v17 = vsel %vm59_vm0, %v63_v10, %v44_v2  ;;  %290 = vmatpush3.bf16.msra.mxu0 %v316_v12 }
   0x5   :  { %65 = vrot.lane.b32.xlu1 %v62_v8, %s349_s21  ;;  %v79_v18 = vrot.slane %v47_v11, 1  ;;  %v71_v19 = vrot.slane %v37_v5, 2  ;;  %v51_v20 = vrot.slane %v49_v13, 1  ;;  %v80_v22 = vrot.slane %v49_v13, 2  ;;  %291 = vmatprep.subr.bf16.mxu0 %v317_v15 }
   0x6   :  { %v40_v16 = vor.u32 %v39_v9, %v35_v4 }
   0x7   :  { %v52_v25 = vor.u32 %v51_v20, %v47_v11  ;;  %v81_v26 = vor.u32 %v80_v22, %v79_v18  ;;  %v72_v27 = vor.u32 %v71_v19, %v70_v14 }
   0x8   :  { %v45_v23 = vsel %vm33_vm1, %v40_v16, %v44_v2  ;;  %292 = vmatpush3.bf16.msra.mxu0 %v317_v15 }
   0x9   :  { %54 = vrot.lane.b32.xlu0 %v45_v23, %s350_s25  ;;  %67 = vrot.lane.b32.xlu1 %v64_v17, %s349_s21  ;;  %v53_v28 = vsel %vm33_vm1, %v52_v25, %v44_v2  ;;  %v82_v29 = vsel %vm69_vm2, %v81_v26, %v77_v21 }
   0xa   :  { %293 = vmatprep.subr.bf16.mxu0 %v318_v24 }
   0xd   :  { %56 = vrot.lane.b32.xlu0 %v53_v28, %s350_s25  ;;  %85 = vrot.lane.b32.xlu1 %v82_v29, %s351_s28 }
   0xe   :  { %9 = vsyncpa [#allocation3], 0  ;;  %v78_v31 = vsel %vm69_vm2, %v72_v27, %v77_v21  ;;  %294 = vmatpush3.bf16.msra.mxu0 %v318_v24  ;;  %v320_v32 = vld [vmem:[%s448_s1 + $0x20] sm:$0xff]   ;;  %v321_v33 = vld [vmem:[%s448_s1 + $0x28] sm:$0xff]   ;;  %vm87_vm3 = vcmask 261120   ;;  %vm92_vm4 = vcmask 523264  }
   0xf   :  { %295 = vmatprep.subr.bf16.mxu0 %v319_v30  ;;  %v322_v34 = vld [vmem:[%s448_s1 + $0x30] sm:$0xff]   ;;  %v323_v35 = vld [vmem:[%s448_s1 + $0x38] sm:$0xff]   ;;  %vm97_vm5 = vcmask 785408   ;;  %v270_v48 = vld [vmem:[%s449_s2] ss:$0 sm:$0xff]  ;;  %s352_s2 = smov [#allocation2]  }
  0x10   :  { %v228_v57 = vld [vmem:[%s450_s3] sm:$0xff]  ;;  %v229_v59 = vld [vmem:[%s450_s3 + $0x8] sm:$0xff]  ;;  %s260_s3 = sshll.u32 %s352_s2, 4  ;;  %vm250_vm6 = vcmask 1041409   ;;  %s261_s3 = int_to_ptr.vmem [resolvable:$true] %s260_s3 }
  0x11   :  { %83 = vrot.lane.b32.xlu0 %v78_v31, %s351_s28  ;;  %s324_s16 = scalar_lea.vmem %s261_s3, 32  ;;  %p329_p1 = scmp.lt.s32.totalorder %s261_s3, %s261_s3 }
  0x12   :  { %296 = vmatpush3.bf16.msra.mxu0 %v319_v30  ;;  %p325_p0 = scmp.ne.s32.totalorder %s261_s3, %s324_s16  ;;  %p330_p2 = scmp.lt.s32.totalorder %s324_s16, %s324_s16 }
  0x13   :  { %297 = vmatprep.subr.bf16.mxu0 %v320_v32 }
  0x14   :  { %p331_p3 = por %p330_p2, %p329_p1 }
  0x16   :  { %298 = vmatpush3.bf16.msra.mxu0 %v320_v32  ;;  %p332_p4 = pnand %p331_p3, %p325_p0 }
  0x17   :  { %299 = vmatprep.subr.bf16.mxu0 %v321_v33 }
  0x1a   :  { %300 = vmatpush3.bf16.msra.mxu0 %v321_v33 }
  0x1b   :  { %301 = vmatprep.subr.bf16.mxu0 %v322_v34 }
  0x1e   :  { %302 = vmatpush3.bf16.msra.mxu0 %v322_v34 }
  0x1f   :  { %303 = vmatprep.subr.bf16.mxu0 %v323_v35 }
  0x22   :  { %304 = vmatpush3.bf16.msra.mxu0 %v323_v35 }
  0x77   :  { %v66_v36 = vpop.permute.xlu1 %65 }
  0x7b   :  { %v55_v37 = vpop.permute.xlu0 %54  ;;  %v68_v38 = vpop.permute.xlu1 %67 }
  0x7c   :  { %v89_v40 = vsel %vm87_vm3, %v381_v0, %v55_v37 }
  0x7d   :  { %v94_v45 = vsel %vm92_vm4, %v89_v40, %v66_v36 }
  0x7f   :  { %v57_v39 = vpop.permute.xlu0 %56  ;;  %v86_v42 = vpop.permute.xlu1 %85 }
  0x80   :  { %v91_v41 = vsel %vm87_vm3, %v389_v6, %v57_v39 }
  0x81   :  { %v96_v43 = vsel %vm92_vm4, %v91_v41, %v68_v38 }
  0x82   :  { %v102_v47 = vsel %vm97_vm5, %v96_v43, %v86_v42 }
  0x83   :  { %v84_v44 = vpop.permute.xlu0 %83 }
  0x84   :  { %v99_v46 = vsel %vm97_vm5, %v94_v45, %v84_v44 }
  0x85   :  { %305 = vmatprep.mubr.bf16.mxu0 %v99_v46 }
  0x86   :  { %306 = vmatmul.mubr.bf16.vlgmr.msra.gmra.mrb[0].mxu0 %v102_v47 }
 0x159   :  { %v307_v49 = vpop.f32.mrb[0].mxu0 }
 0x15a   :  { %v218_v50 = vadd.f32 %v307_v49, %v270_v48  ;;  %v209_v51 = vpop.f32.mrb[1].mxu0 }
 0x15b   :  { %v210_v52 = vadd.f32 %v270_v48, %v209_v51  ;;  %v308_v53 = vpop.f32.mrb[2].mxu0 }
 0x15c   :  { %v226_v54 = vmax.f32 %v218_v50, 0.0  ;;  %v221_v55 = vadd.f32 %v308_v53, %v270_v48  ;;  %v212_v56 = vpop.f32.mrb[3].mxu0 }
 0x15d   :  { %v224_v58 = vmax.f32 %v210_v52, 0.0  ;;  %v213_v60 = vadd.f32 %v270_v48, %v212_v56 }
 0x15e   :  { %v227_v61 = vmax.f32 %v221_v55, 0.0  ;;  %v232_v63 = vmul.f32 %v228_v57, %v226_v54 }
 0x15f   :  { %v225_v62 = vmax.f32 %v213_v60, 0.0  ;;  %v230_v1 = vmul.f32 %v228_v57, %v224_v58 }
 0x160   :  { %v233_v0 = vmul.f32 %v229_v59, %v227_v61 }
 0x161   :  { %v231_v2 = vmul.f32 %v229_v59, %v225_v62 }
 0x162   :  { %v241_v3 = vmax.f32 %v232_v63, %v233_v0 }
 0x163   :  { %v234_v4 = vmax.f32 %v230_v1, %v231_v2 }
 0x164   :  { %v242_v5 = vrot.slane %v241_v3, 4 }
 0x165   :  { %v235_v6 = vrot.slane %v234_v4, 4 }
 0x166   :  { %v243_v7 = vmax.f32 %v241_v3, %v242_v5 }
 0x167   :  { %v236_v8 = vmax.f32 %v234_v4, %v235_v6 }
 0x168   :  { %v244_v9 = vrot.slane %v243_v7, 2 }
 0x169   :  { %v237_v10 = vrot.slane %v236_v8, 2 }
 0x16a   :  { %v245_v11 = vmax.f32 %v243_v7, %v244_v9 }
 0x16b   :  { %v238_v12 = vmax.f32 %v236_v8, %v237_v10 }
 0x16c   :  { %v246_v13 = vrot.slane %v245_v11, 1 }
 0x16d   :  { %v239_v14 = vrot.slane %v238_v12, 1 }
 0x16e   :  { %v247_v15 = vmax.f32 %v245_v11, %v246_v13 }
 0x16f   :  { %v240_v16 = vmax.f32 %v238_v12, %v239_v14 }
 0x171   :  { %v251_v17 = vsel %vm250_vm6, %v247_v15, %v240_v16 }
 0x172   :  { %253 = vst [vmem:[#allocation2] sm:$0x3] %v251_v17 }
 0x173   :  { %335 = shalt.err (!%p332_p4)
}
 0x174   :  { %s336_s19 = scalar_lea.hbm %s451_s4, 32 }
 0x175   :  { %p337_p5 = scmp.ne.s32.totalorder %s451_s4, %s336_s19  ;;  %p340_p6 = scmp.lt.u32.totalorder %s336_s19, %s451_s4 }
 0x177   :  { %p342_p7 = pnand %p340_p6, %p337_p5 }
 0x179   :  { %345 = shalt.err (!%p342_p7)
}
 0x17a   :  { %263 = dma.vmem_to_hbm [thread:$0]  %s261_s3, 32, %s451_s4, [#allocation3]  }
 0x17b   :  { %346 = dma.done.wait [#allocation3], 32  }
 0x17c   :  { %347 = vsyncadd [#allocation3], 4294967264 }
 0x17d   :  { %267 = vsyncpa [#allocation3], 1 }

</bundles_post_ra>
